<compile_context>
chip_gen: v5e
topology: v5e:2x2
jax: 0.10.0
libtpu: 0.0.40
codegen_flags: <defaults>
</compile_context>

<pallas_src>
import jax
import jax.numpy as jnp
from jax.experimental import pallas as pl
from jax.experimental.pallas import tpu as pltpu

IN_FEATURES = 19
OUT_FEATURES = 7
MAX_TM = 32768  # rows per tile cap: ~6.8 MiB double-buffered, fits v5e/v6e/v7x budgets


def _linear_kernel(x_ref, w_ref, b_ref, o_ref):
    # One (TM, 19) row tile per grid step; W/bias are resident (constant index_map).
    x = x_ref[...]                                   # (TM, 19), native dtype
    w = w_ref[...]                                   # (19, 7)
    b = b_ref[...]                                   # (1, 7)  f32
    acc = jnp.dot(x, w, preferred_element_type=jnp.float32)   # MXU, f32 accumulate
    o_ref[...] = (acc + b).astype(o_ref.dtype)


def s_linear_classifier(x, weight, bias, *, max_tm=MAX_TM):
    """Forward of SLinearClassifier.

    x:      any shape whose total size is divisible by 19 (flattened to (-1, 19))
    weight: (7, 19)  -- PyTorch nn.Linear convention (out_features, in_features)
    bias:   (7,)
    returns (N, 7) float32 with N = x.size // 19
    """
    if x.size % IN_FEATURES != 0:
        raise ValueError(
            f"x.size={x.size} is not divisible by in_features={IN_FEATURES}"
        )
    x2d = jnp.reshape(x, (-1, IN_FEATURES))          # view(-1, 19); keep native dtype
    n = x2d.shape[0]

    # Row tile: multiple of 8, capped; partial last block handled by Pallas masking.
    tm = min(max_tm, max(8, ((n + 7) // 8) * 8))
    grid = (pl.cdiv(n, tm),)

    w_t = jnp.transpose(weight).astype(x2d.dtype)    # (19, 7), match x dtype for MXU
    b2d = jnp.reshape(bias, (1, OUT_FEATURES)).astype(jnp.float32)

    itemsize = jnp.dtype(x2d.dtype).itemsize
    cost = pl.CostEstimate(
        flops=2 * n * IN_FEATURES * OUT_FEATURES,
        bytes_accessed=(
            n * IN_FEATURES * itemsize          # stream x
            + n * OUT_FEATURES * 4              # write out (f32)
            + IN_FEATURES * OUT_FEATURES * itemsize
            + OUT_FEATURES * 4
        ),
        transcendentals=0,
    )

    out = pl.pallas_call(
        _linear_kernel,
        out_shape=jax.ShapeDtypeStruct((n, OUT_FEATURES), jnp.float32),
        grid=grid,
        in_specs=[
            pl.BlockSpec((tm, IN_FEATURES), lambda i: (i, 0)),
            pl.BlockSpec((IN_FEATURES, OUT_FEATURES), lambda i: (0, 0)),
            pl.BlockSpec((1, OUT_FEATURES), lambda i: (0, 0)),
        ],
        out_specs=pl.BlockSpec((tm, OUT_FEATURES), lambda i: (i, 0)),
        compiler_params=pltpu.CompilerParams(
            dimension_semantics=("parallel",),
        ),
        cost_estimate=cost,
    )(x2d, w_t, b2d)
    return out


def init_params(key):
    # Deterministic init matching nn.Linear(19, 7) parameter shapes.
    # (PyTorch default: U(-1/sqrt(fan_in), 1/sqrt(fan_in)) reproduced here.)
    k_w, k_b = jax.random.split(key)
    bound = 1.0 / jnp.sqrt(jnp.float32(IN_FEATURES))
    weight = jax.random.uniform(k_w, (OUT_FEATURES, IN_FEATURES), jnp.float32, -bound, bound)
    bias = jax.random.uniform(k_b, (OUT_FEATURES,), jnp.float32, -bound, bound)
    return weight, bias


if __name__ == "__main__":
    key = jax.random.PRNGKey(0)
    k_x, k_p = jax.random.split(key)

    # Small input consistent with forward: x.view(-1, 19) -> (2*4, 19)
    x = jax.random.normal(k_x, (2, 4, 19), jnp.float32)
    weight, bias = init_params(k_p)

    out = s_linear_classifier(x, weight, bias)
    jax.block_until_ready(out)

    # Reference check in plain JAX (same semantics as the PyTorch module).
    ref = jnp.reshape(x, (-1, 19)).astype(jnp.float32) @ weight.T + bias
    assert out.shape == (8, 7)
    assert jnp.allclose(out, ref, atol=1e-5, rtol=1e-5)

    # Also exercise a larger, non-tile-divisible N to validate the tiled path.
    x_big = jax.random.normal(k_x, (5000, 19), jnp.bfloat16)  # N=5000, not a multiple of 8
    out_big = s_linear_classifier(x_big, weight, bias, max_tm=1024)
    jax.block_until_ready(out_big)
    ref_big = x_big.astype(jnp.float32) @ weight.T + bias
    assert out_big.shape == (5000, 7)
    assert jnp.allclose(out_big, ref_big, atol=2e-2, rtol=2e-2)

    print("KERNEL_OK")
</pallas_src>

<mosaic_0001>
module attributes {stable_mosaic.version = 11 : i64} {
  func.func @_linear_kernel(%arg0: i32, %arg1: memref<8x19xf32, #tpu.memory_space<vmem>>, %arg2: memref<19x7xf32, #tpu.memory_space<vmem>>, %arg3: memref<1x7xf32, #tpu.memory_space<vmem>>, %arg4: memref<8x7xf32, #tpu.memory_space<vmem>>) attributes {dimension_semantics = [#tpu.dimension_semantics<parallel>], iteration_bounds = array<i64: 1>, scalar_prefetch = 0 : i64, scratch_operands = 0 : i64, tpu.core_type = #tpu.core_type<tc>, window_params = [{transform_indices = @transform_0, window_bounds = array<i64: 8, 19>}, {pipeline_mode = #tpu.pipeline_mode<synchronous>, transform_indices = @transform_1, window_bounds = array<i64: 19, 7>}, {pipeline_mode = #tpu.pipeline_mode<synchronous>, transform_indices = @transform_2, window_bounds = array<i64: 1, 7>}, {transform_indices = @transform_3, window_bounds = array<i64: 8, 7>}]} {
    %c0 = arith.constant 0 : index
    %c0_0 = arith.constant 0 : index
    %0 = vector.load %arg1[%c0, %c0_0] : memref<8x19xf32, #tpu.memory_space<vmem>>, vector<8x19xf32>
    %c0_1 = arith.constant 0 : index
    %c0_2 = arith.constant 0 : index
    %1 = vector.load %arg2[%c0_1, %c0_2] : memref<19x7xf32, #tpu.memory_space<vmem>>, vector<19x7xf32>
    %c0_3 = arith.constant 0 : index
    %c0_4 = arith.constant 0 : index
    %2 = vector.load %arg3[%c0_3, %c0_4] : memref<1x7xf32, #tpu.memory_space<vmem>>, vector<1x7xf32>
    %cst = arith.constant dense<0.000000e+00> : vector<8x7xf32>
    %3 = tpu.matmul %0, %1, %cst {dimension_numbers = #tpu.dot_dimension_numbers<[1], [0], [0], [1], [0, 0, 1, 1], [], []>} : vector<8x19xf32>, vector<19x7xf32>, vector<8x7xf32> -> vector<8x7xf32>
    %4 = vector.broadcast %2 : vector<1x7xf32> to vector<8x7xf32>
    %5 = arith.addf %3, %4 : vector<8x7xf32>
    %c0_5 = arith.constant 0 : index
    %c0_6 = arith.constant 0 : index
    %6 = vector.load %arg4[%c0_5, %c0_6] : memref<8x7xf32, #tpu.memory_space<vmem>>, vector<8x7xf32>
    tpu.vector_store %arg4[%c0_5, %c0_6], %5 {strides = array<i32>} : memref<8x7xf32, #tpu.memory_space<vmem>>, vector<8x7xf32>,
    return
  }
  func.func @transform_0(%arg0: i32) -> (i32, i32) {
    %c0_i32 = arith.constant 0 : i32
    %c0_i32_0 = arith.constant 0 : i32
    return %arg0, %c0_i32 : i32, i32
  }
  func.func @transform_1(%arg0: i32) -> (i32, i32) {
    %c0_i32 = arith.constant 0 : i32
    %c0_i32_0 = arith.constant 0 : i32
    %c0_i32_1 = arith.constant 0 : i32
    return %c0_i32, %c0_i32_0 : i32, i32
  }
  func.func @transform_2(%arg0: i32) -> (i32, i32) {
    %c0_i32 = arith.constant 0 : i32
    %c0_i32_0 = arith.constant 0 : i32
    %c0_i32_1 = arith.constant 0 : i32
    return %c0_i32, %c0_i32_0 : i32, i32
  }
  func.func @transform_3(%arg0: i32) -> (i32, i32) {
    %c0_i32 = arith.constant 0 : i32
    %c0_i32_0 = arith.constant 0 : i32
    return %arg0, %c0_i32 : i32, i32
  }
}

</mosaic_0001>

<bundles_post_ra>
// kernel: tpu_custom_call.1
= control target key start
LH: loop header
LB: loop body
LE: loop exit
PB: predicated region body
PF: predicated region fallthrough
CT: control target
= control target key end

     0   :  { %vm27_vm0 = vcmask 1042432   ;;  %s138_s0 = inlined_call_operand.vmem [shape: f32[8,19], index: 0, kind: input, shape index: {}]   ;;  %s139_s1 = inlined_call_operand.vmem [shape: f32[19,7], index: 1, kind: input, shape index: {}]   ;;  %s140_s2 = inlined_call_operand.vmem [shape: f32[1,7], index: 2, kind: input, shape index: {}]   ;;  %s141_s3 = inlined_call_operand.hbm [shape: f32[8,7], index: 3, kind: output, shape index: {}]  }
   0x1   :  { %v18_v0 = vld [vmem:[%s139_s1 + $0x10] sm:$0x7]  ;;  %v17_v1 = vld [vmem:[%s139_s1 + $0x8] sm:$0xff]  ;;  %v16_v2 = vld [vmem:[%s139_s1] sm:$0xff] }
   0x2   :  { %69 = vmatpush.msk.msra.mxu0 %vm27_vm0, %v18_v0 }
   0x3   :  { %8 = vsyncpa [#allocation3], 0  ;;  %v15_v3 = vld [vmem:[%s138_s0] sm:$0xff]  ;;  %vm23_vm1 = vcmask 154624   ;;  %s99_s22 = smov [#allocation2]   ;;  %s60_s26 = sshll.u32 %s141_s3, 4  ;;  %s61_s26 = int_to_ptr.hbm [resolvable:$true] %s60_s26 }
   0x4   :  { %45 = vmatpush.msra.mxu0 %v17_v1  ;;  %v72_v4 = vld [vmem:[%s140_s2] ss:$0 sm:$0xff]  ;;  %s58_s23 = sshll.u32 %s99_s22, 4  ;;  %vm51_vm2 = vcmask 56320   ;;  %s59_s23 = int_to_ptr.vmem [resolvable:$true] %s58_s23 }
   0x6   :  { %46 = vmatpush.msra.mxu0 %v16_v2 }
   0x7   :  { %70 = vmatmul.msk.f32.vlgmr.msra.gmra.mxu0 %vm23_vm1, %v15_v3 }
  0x84   :  { %v48_v5 = vpop.f32.mrf.mxu0 }
  0x85   :  { %v49_v6 = vadd.f32 %v72_v4, %v48_v5 }
  0x87   :  { %52 = vst.msk [vmem:[#allocation2] sm:$0xff] %vm51_vm2, %v49_v6 }
  0x88   :  { %63 = dma.vmem_to_hbm [thread:$0]  %s59_s23, 128, %s61_s26, [#allocation3]  }
  0x89   :  { %97 = dma.done.wait [#allocation3], 128  }
  0x8a   :  { %98 = vsyncadd [#allocation3], 4294967168 }
  0x8b   :  { %68 = vsyncpa [#allocation3], 1 }

</bundles_post_ra>
